<compile_context>
chip_gen: v7x
topology: tpu7x:2x2x1
jax: 0.10.0
libtpu: 0.0.40
codegen_flags: <defaults>
</compile_context>

<pallas_src>
import functools
import math

import jax
import jax.numpy as jnp
from jax import lax
from jax.experimental import pallas as pl
from jax.experimental.pallas import tpu as pltpu


def _pe_dropout_kernel(seed_ref, x_ref, pe_ref, o_ref, *, C, tb, tc, dropout_p):
    """One (tb, tc) block of the (B, S*D) folded view: out = dropout(x + pe)."""
    # pe block is (1, tc); broadcasts across the tb batch rows.
    val = x_ref[...].astype(jnp.float32) + pe_ref[...]

    if dropout_p > 0.0:
        ci = pl.program_id(0)  # folded-column tile (outer)
        bi = pl.program_id(1)  # batch-row tile     (inner)

        # Scalar affine base (scalar unit): global flat offset of this block + seed mix.
        row0 = (bi * tb).astype(jnp.uint32)
        col0 = (ci * tc).astype(jnp.uint32)
        seed_u = seed_ref[0].astype(jnp.uint32)
        base = (row0 * jnp.uint32(C) + col0
                + (seed_u + jnp.uint32(0x9E3779B9)) * jnp.uint32(0x85EBCA6B))

        # Unique per-element flat index.
        # TODO(synk): index wraps (aliases) if B*S*D ever exceeds 2**32 elements.
        row = lax.broadcasted_iota(jnp.int32, (tb, tc), 0).astype(jnp.uint32)
        col = lax.broadcasted_iota(jnp.int32, (tb, tc), 1).astype(jnp.uint32)
        h = base + row * jnp.uint32(C) + col

        # splitmix32-style finalizer (2 multiply rounds).
        h = (h ^ (h >> 16)) * jnp.uint32(0x7FEB352D)
        h = (h ^ (h >> 15)) * jnp.uint32(0x846CA68B)
        h = h ^ (h >> 16)

        # Keep with probability (1 - p): compare top 24 bits as int32 (safe compare).
        thresh = jnp.int32(int(round(dropout_p * float(1 << 24))))
        keep = (h >> 8).astype(jnp.int32) >= thresh
        val = jnp.where(keep, val * jnp.float32(1.0 / (1.0 - dropout_p)),
                        jnp.float32(0.0))

    o_ref[...] = val.astype(o_ref.dtype)


def _choose_tiles(B, C, itemsize, target_bytes):
    """Pick (TB, TC) block dims for the folded (B, C=S*D) view.

    TC is a multiple of 128 lanes (or the full C); TB is a multiple of the packed
    sublane count (or the full B).  Targets ~target_bytes per x block so every DMA is
    a few MiB (HBM roofline) while the double-buffered footprint stays small.
    """
    itemsize = max(1, int(itemsize))
    sub = 8 * max(1, 4 // itemsize)          # 8 (f32) / 16 (bf16) / 32 (int8) sublanes
    tb = B if B <= sub else sub
    cols = max(128, (target_bytes // (tb * itemsize)) // 128 * 128)
    if cols >= C:
        tc = C                                # full-width rows (lane-dense, >=128 or full)
        rows = target_bytes // max(1, C * itemsize)
        if rows >= B:
            tb = B
        elif B > sub:
            tb = max(sub, (rows // sub) * sub)
        # else: tb stays == B (already full extent)
    else:
        tc = cols
    return tb, tc


def positional_encoding_forward(embedding, *, dropout_p=0.0, seed=0,
                                target_block_bytes=4 << 20):
    """embedding: [B, S, D]. Returns dropout(embedding + pos_encoding)."""
    B, S, D = embedding.shape
    C = S * D

    # pos_encoding buffer (mirrors the module's __init__): all-sin variant.
    positions = jnp.arange(S, dtype=jnp.float32)[:, None]
    div_term = jnp.exp(jnp.arange(D, dtype=jnp.float32) * (-math.log(10000.0) / D))
    pe = jnp.sin(positions * div_term).reshape(1, C)        # (1, S*D), f32

    # Lane-dense fold: free, contiguity-preserving reshape.
    x2 = embedding.reshape(B, C)

    tb, tc = _choose_tiles(B, C, embedding.dtype.itemsize, int(target_block_bytes))
    grid = (pl.cdiv(C, tc), pl.cdiv(B, tb))   # batch innermost -> pe block re-used

    seed_arr = jnp.asarray([seed], dtype=jnp.int32)
    kernel = functools.partial(_pe_dropout_kernel, C=C, tb=tb, tc=tc,
                               dropout_p=float(dropout_p))

    # Double-buffered in + out + pe chunk, plus headroom; clears v5e's 16 MiB default
    # scoped limit and stays well under v7x's 64 MiB physical per-TC VMEM.
    in_bytes = tb * tc * embedding.dtype.itemsize
    pe_bytes = tc * 4
    vmem_limit = int(min(48 << 20, max(16 << 20, 2 * (2 * in_bytes + pe_bytes) + (4 << 20))))

    out2 = pl.pallas_call(
        kernel,
        out_shape=jax.ShapeDtypeStruct((B, C), embedding.dtype),
        grid_spec=pltpu.PrefetchScalarGridSpec(
            num_scalar_prefetch=1,
            grid=grid,
            in_specs=[
                pl.BlockSpec((tb, tc), lambda ci, bi, seed: (bi, ci)),
                pl.BlockSpec((1, tc), lambda ci, bi, seed: (0, ci)),
            ],
            out_specs=pl.BlockSpec((tb, tc), lambda ci, bi, seed: (bi, ci)),
        ),
        compiler_params=pltpu.CompilerParams(
            # Both axes are independent (no scratch / accumulator), so both can be
            # sharded across TensorCores on v7x megacore.
            dimension_semantics=("parallel", "parallel"),
            vmem_limit_bytes=vmem_limit,
        ),
    )(seed_arr, x2, pe)
    return out2.reshape(B, S, D)


def _reference(embedding):
    """Pure-JAX reference of the deterministic part (eval mode / p = 0)."""
    _, S, D = embedding.shape
    positions = jnp.arange(S, dtype=jnp.float32).reshape(1, S, 1)
    div_term = jnp.exp(jnp.arange(D, dtype=jnp.float32) * (-math.log(10000.0) / D))
    pe = jnp.sin(positions * div_term)  # (1, S, D)
    return embedding + pe


if __name__ == "__main__":
    key = jax.random.PRNGKey(0)
    B, max_len, dim_model = 2, 8, 32
    dropout_p = 0.1

    embedding = jax.random.normal(key, (B, max_len, dim_model), dtype=jnp.float32)

    # Eval-mode forward (dropout identity) vs pure-JAX reference.
    out_det = jax.block_until_ready(positional_encoding_forward(embedding, dropout_p=0.0))
    ref = _reference(embedding)
    assert out_det.shape == (B, max_len, dim_model)
    assert jnp.allclose(out_det, ref, atol=1e-5, rtol=1e-5), "mismatch vs reference"

    # Multi-block / ragged-edge path (forced tiny blocks) must still be exact.
    emb2 = jax.random.normal(jax.random.PRNGKey(1), (12, 40, 100), dtype=jnp.float32)
    out2 = jax.block_until_ready(
        positional_encoding_forward(emb2, dropout_p=0.0, target_block_bytes=64 * 1024))
    assert jnp.allclose(out2, _reference(emb2), atol=1e-5, rtol=1e-5), "ragged mismatch"

    # Training-mode forward: each element is either 0 (dropped) or (x+pe)/(1-p).
    out_train = jax.block_until_ready(
        positional_encoding_forward(embedding, dropout_p=dropout_p, seed=0))
    assert out_train.shape == (B, max_len, dim_model)
    scale = 1.0 / (1.0 - dropout_p)
    kept_ok = jnp.abs(out_train - ref * scale) < 1e-4
    dropped = out_train == 0.0
    assert bool(jnp.all(kept_ok | dropped)), "dropout output not {0, scaled value}"
    assert float(jnp.mean(dropped.astype(jnp.float32))) < 0.5, "drop rate implausible"

    print("KERNEL_OK")
</pallas_src>

<mosaic_0001>
module attributes {stable_mosaic.version = 11 : i64} {
  func.func @_pe_dropout_kernel(%arg0: i32, %arg1: i32, %arg2: memref<1xi32, #tpu.memory_space<smem>>, %arg3: memref<2x256xf32, #tpu.memory_space<vmem>>, %arg4: memref<1x256xf32, #tpu.memory_space<vmem>>, %arg5: memref<2x256xf32, #tpu.memory_space<vmem>>) attributes {dimension_semantics = [#tpu.dimension_semantics<parallel>, #tpu.dimension_semantics<parallel>], iteration_bounds = array<i64: 1, 1>, scalar_prefetch = 1 : i64, scratch_operands = 0 : i64, tpu.core_type = #tpu.core_type<tc>, window_params = [{transform_indices = @transform_0, window_bounds = array<i64: 2, 256>}, {transform_indices = @transform_1, window_bounds = array<i64: 1, 256>}, {transform_indices = @transform_2, window_bounds = array<i64: 2, 256>}]} {
    %c0 = arith.constant 0 : index
    %c0_0 = arith.constant 0 : index
    %0 = vector.load %arg3[%c0, %c0_0] : memref<2x256xf32, #tpu.memory_space<vmem>>, vector<2x256xf32>
    %c0_1 = arith.constant 0 : index
    %c0_2 = arith.constant 0 : index
    %1 = vector.load %arg4[%c0_1, %c0_2] : memref<1x256xf32, #tpu.memory_space<vmem>>, vector<1x256xf32>
    %2 = vector.broadcast %1 : vector<1x256xf32> to vector<2x256xf32>
    %3 = arith.addf %0, %2 : vector<2x256xf32>
    %c0_3 = arith.constant 0 : index
    %c0_4 = arith.constant 0 : index
    %4 = vector.load %arg5[%c0_3, %c0_4] : memref<2x256xf32, #tpu.memory_space<vmem>>, vector<2x256xf32>
    tpu.vector_store %arg5[%c0_3, %c0_4], %3 {strides = array<i32>} : memref<2x256xf32, #tpu.memory_space<vmem>>, vector<2x256xf32>,
    return
  }
  func.func @transform_0(%arg0: i32, %arg1: i32, %arg2: memref<1xi32, #tpu.memory_space<smem>>) -> (i32, i32) {
    %c0_i32 = arith.constant 0 : i32
    return %arg1, %arg0 : i32, i32
  }
  func.func @transform_1(%arg0: i32, %arg1: i32, %arg2: memref<1xi32, #tpu.memory_space<smem>>) -> (i32, i32) {
    %c0_i32 = arith.constant 0 : i32
    %c0_i32_0 = arith.constant 0 : i32
    return %c0_i32, %arg0 : i32, i32
  }
  func.func @transform_2(%arg0: i32, %arg1: i32, %arg2: memref<1xi32, #tpu.memory_space<smem>>) -> (i32, i32) {
    %c0_i32 = arith.constant 0 : i32
    return %arg1, %arg0 : i32, i32
  }
}

</mosaic_0001>

<bundles_post_ra>
// kernel: tpu_custom_call.1
= control target key start
LH: loop header
LB: loop body
LE: loop exit
PB: predicated region body
PF: predicated region fallthrough
CT: control target
= control target key end

     0   :  { %9 = vsyncpa [#allocation5], 0  ;;  %s164_s0 = inlined_call_operand.<no memory space> [shape: s32[1], index: 0, kind: input, shape index: {}]   ;;  %s165_s1 = inlined_call_operand.hbm [shape: f32[2,256], index: 1, kind: input, shape index: {}]   ;;  %s166_s2 = inlined_call_operand.vmem [shape: f32[1,256], index: 2, kind: input, shape index: {}]   ;;  %s167_s3 = inlined_call_operand.hbm [shape: f32[2,256], index: 3, kind: output, shape index: {}]  }
   0x1   :  { %10 = vsyncpa [#allocation6], 0  ;;  %s114_s12 = smov [#allocation4]   ;;  %s66_s16 = scalar_lea.hbm %s165_s1, 64 }
   0x2   :  { %s17_s13 = sshll.u32 %s114_s12, 4  ;;  %p67_p0 = scmp.ne.s32.totalorder %s165_s1, %s66_s16  ;;  %s18_s13 = int_to_ptr.vmem [resolvable:$true] %s17_s13 }
   0x3   :  { %p70_p1 = scmp.lt.u32.totalorder %s66_s16, %s165_s1 }
   0x5   :  { %p72_p2 = pnand %p70_p1, %p67_p0 }
   0x7   :  { %75 = shalt.err (!%p72_p2)
}
   0x8   :  { %s76_s20 = scalar_lea.vmem %s18_s13, 64  ;;  %p81_p4 = scmp.lt.s32.totalorder %s18_s13, %s18_s13 }
   0x9   :  { %p77_p3 = scmp.ne.s32.totalorder %s18_s13, %s76_s20  ;;  %p82_p5 = scmp.lt.s32.totalorder %s76_s20, %s76_s20 }
   0xb   :  { %p83_p6 = por %p82_p5, %p81_p4 }
   0xd   :  { %p84_p7 = pnand %p83_p6, %p77_p3 }
   0xf   :  { %87 = shalt.err (!%p84_p7)
}
  0x10   :  { %20 = dma.hbm_to_vmem [thread:$0]  %s165_s1, 64, %s18_s13, [#allocation5]  }
  0x11   :  { %110 = dma.done.wait [#allocation5], 64  }
  0x12   :  { %111 = vsyncadd [#allocation5], 4294967232  ;;  %v29_v0 = vlaneseq  ;;  %v115_v1 = vmov 1983009808   ;;  %v27_v7 = vld [vmem:[%s166_s2] sm:$0x3] }
  0x13   :  { %v39_v2 = vunpack.c.l.s4 %v115_v1  ;;  %v26_v12 = vld [vmem:[#allocation4] sm:$0xf]  ;;  %s116_s25 = smov [#allocation7]  }
  0x14   :  { %v30_v3 = vshrl.u32 %v29_v0, 7  ;;  %s54_s1 = sshll.u32 %s116_s25, 4  ;;  %s55_s1 = int_to_ptr.vmem [resolvable:$true] %s54_s1 }
  0x15   :  { %v40_v6 = vunpack.c.0.s8 %v39_v2  ;;  %s88_s26 = scalar_lea.vmem %s55_s1, 64  ;;  %p93_p9 = scmp.lt.s32.totalorder %s55_s1, %s55_s1 }
  0x16   :  { %v31_v4 = vsub.s32 0, %v30_v3  ;;  %v35_v5 = vsub.s32 1, %v30_v3  ;;  %p89_p8 = scmp.ne.s32.totalorder %s55_s1, %s88_s26  ;;  %p94_p10 = scmp.lt.s32.totalorder %s88_s26, %s88_s26 }
  0x17   :  { %v43_v10 = vsub.s32 %v40_v6, %v30_v3 }
  0x18   :  { %v32_v8 = vrot.slane %v27_v7, %v31_v4  ;;  %v36_v9 = vrot.slane %v27_v7, %v35_v5  ;;  %p95_p11 = por %p94_p10, %p93_p9 }
  0x1a   :  { %v37_v11 = vcombine.low %v32_v8, %v36_v9  ;;  %p96_p12 = pnand %p95_p11, %p89_p8 }
  0x1c   :  { %v44_v13 = vrot.slane %v37_v11, %v43_v10 }
  0x1e   :  { %v46_v14 = vadd.f32 %v44_v13, %v26_v12 }
  0x20   :  { %47 = vst [vmem:[#allocation7] sm:$0xf] %v46_v14 }
  0x21   :  { %99 = shalt.err (!%p96_p12)
}
  0x22   :  { %s100_s28 = scalar_lea.hbm %s167_s3, 64 }
  0x23   :  { %p101_p13 = scmp.ne.s32.totalorder %s167_s3, %s100_s28  ;;  %p104_p0 = scmp.lt.u32.totalorder %s100_s28, %s167_s3 }
  0x25   :  { %p106_p1 = pnand %p104_p0, %p101_p13 }
  0x27   :  { %109 = shalt.err (!%p106_p1)
}
  0x28   :  { %57 = dma.vmem_to_hbm [thread:$0]  %s55_s1, 64, %s167_s3, [#allocation6]  }
  0x29   :  { %112 = dma.done.wait [#allocation6], 64  }
  0x2a   :  { %113 = vsyncadd [#allocation6], 4294967232 }
  0x2b   :  { %61 = vsyncpa [#allocation5], 1 }
  0x2c   :  { %62 = vsyncpa [#allocation6], 1 }

</bundles_post_ra>
